<compile_context>
chip_gen: v7x
topology: tpu7x:2x2x1
jax: 0.10.0
libtpu: 0.0.40
codegen_flags: <defaults>
</compile_context>

<pallas_src>
import functools

import jax
import jax.numpy as jnp
from jax import lax
from jax.experimental import pallas as pl
from jax.experimental.pallas import tpu as pltpu


def _aspp_kernel(x_ref, w_ref, scale_ref, off_ref, o_ref, acc_ref, *,
                 h_out, w_out, dilation):
    # x_ref:     (1, Hp*W_out, K*Cin)   bf16  W-folded, spatially flattened input
    # w_ref:     (1, K*Cin, Cout_p)     bf16  weights for tap-row kh
    # scale_ref: (1, Cout_p)            f32   BN scale  = gamma / sqrt(var+eps)
    # off_ref:   (1, Cout_p)            f32   BN offset = beta - mean*scale
    # o_ref:     (1, H_out*W_out, Cout_p)     lane-dense output
    # acc_ref:   (H_out*W_out, Cout_p)  f32   VMEM scratch accumulator
    kh = pl.program_id(1)

    @pl.when(kh == 0)
    def _init():
        acc_ref[...] = jnp.zeros_like(acc_ref)

    # Shifted window for tap-row kh: kh*dilation rows of the padded image, i.e.
    # kh*dilation*W_out flattened rows -- a contiguous, sublane-tile-aligned
    # window of the resident block, so the "shift" costs nothing.
    dw = dilation * w_out
    row0 = pl.multiple_of(kh * dw, dw)
    patch = x_ref[0, pl.ds(row0, h_out * w_out), :]            # (HW, K*Cin) bf16
    acc_ref[...] += jnp.dot(patch, w_ref[0],
                            preferred_element_type=jnp.float32)

    @pl.when(kh == pl.num_programs(1) - 1)
    def _finalize():
        y = acc_ref[...] * scale_ref[...] + off_ref[...]       # fused BN (f32)
        o_ref[0] = jnp.maximum(y, 0.0).astype(o_ref.dtype)     # ReLU, unmasked store


def aspp_module_forward(x_nchw, weight, bn_gamma, bn_beta, bn_mean, bn_var,
                        *, dilation, padding, eps=1e-5):
    """x_nchw: (N, Cin, H, W); weight: (Cout, Cin, K, K) (PyTorch layouts)."""
    N, Cin, H, W = x_nchw.shape
    Cout, _, K, _ = weight.shape
    h_out = H + 2 * padding - dilation * (K - 1)
    w_out = W + 2 * padding - dilation * (K - 1)
    assert h_out > 0 and w_out > 0
    hp = H + 2 * padding
    kcin = K * Cin
    cout_p = ((Cout + 127) // 128) * 128           # lane-dense padded channels

    # ---- glue (plain JAX; XLA fuses these into a couple of passes) ----------
    x_nhwc = jnp.transpose(x_nchw, (0, 2, 3, 1))
    x_pad = jnp.pad(x_nhwc, ((0, 0), (padding, padding), (padding, padding), (0, 0)))
    # im2col along W only: xf[n, h, w, kw*Cin+ci] = x_pad[n, h, w + kw*dilation, ci]
    cols = [x_pad[:, :, kw * dilation: kw * dilation + w_out, :] for kw in range(K)]
    xf = jnp.stack(cols, axis=3).reshape(N, hp, w_out, kcin)
    xf = xf.reshape(N, hp * w_out, kcin).astype(jnp.bfloat16)

    # weights: (Cout, Cin, K, K) -> (K, K*Cin, Cout_p), channel order matches xf
    wt = jnp.transpose(weight, (2, 3, 1, 0)).reshape(K, kcin, Cout)
    wt = jnp.pad(wt, ((0, 0), (0, 0), (0, cout_p - Cout))).astype(jnp.bfloat16)

    # eval-mode BatchNorm folded into a per-channel affine (f32, lane-dense)
    scale = bn_gamma / jnp.sqrt(bn_var + eps)
    offset = bn_beta - bn_mean * scale
    scale = jnp.pad(scale, (0, cout_p - Cout)).reshape(1, cout_p).astype(jnp.float32)
    offset = jnp.pad(offset, (0, cout_p - Cout)).reshape(1, cout_p).astype(jnp.float32)

    kernel = functools.partial(_aspp_kernel, h_out=h_out, w_out=w_out,
                               dilation=dilation)

    out_p = pl.pallas_call(
        kernel,
        out_shape=jax.ShapeDtypeStruct((N, h_out * w_out, cout_p), x_nchw.dtype),
        grid_spec=pltpu.PrefetchScalarGridSpec(
            num_scalar_prefetch=0,
            grid=(N, K),                                    # kh reduction axis last
            in_specs=[
                pl.BlockSpec((1, hp * w_out, kcin), lambda n, kh: (n, 0, 0)),
                pl.BlockSpec((1, kcin, cout_p), lambda n, kh: (kh, 0, 0)),
                pl.BlockSpec((1, cout_p), lambda n, kh: (0, 0)),
                pl.BlockSpec((1, cout_p), lambda n, kh: (0, 0)),
            ],
            out_specs=pl.BlockSpec((1, h_out * w_out, cout_p),
                                   lambda n, kh: (n, 0, 0)),
            scratch_shapes=[pltpu.VMEM((h_out * w_out, cout_p), jnp.float32)],
        ),
        compiler_params=pltpu.CompilerParams(
            dimension_semantics=("parallel", "arbitrary")),
    )(xf, wt, scale, offset)

    out = out_p[:, :, :Cout].reshape(N, h_out, w_out, Cout)
    return jnp.transpose(out, (0, 3, 1, 2))                 # back to NCHW


def _reference(x_nchw, weight, bn_gamma, bn_beta, bn_mean, bn_var,
               *, dilation, padding, eps=1e-5):
    y = lax.conv_general_dilated(
        x_nchw, weight,
        window_strides=(1, 1),
        padding=((padding, padding), (padding, padding)),
        rhs_dilation=(dilation, dilation),
        dimension_numbers=("NCHW", "OIHW", "NCHW"),
        precision=lax.Precision.HIGHEST)
    scale = (bn_gamma / jnp.sqrt(bn_var + eps)).reshape(1, -1, 1, 1)
    offset = (bn_beta - bn_mean * bn_gamma / jnp.sqrt(bn_var + eps)).reshape(1, -1, 1, 1)
    return jnp.maximum(y * scale + offset, 0.0)


if __name__ == "__main__":
    # _ASPPModule(inplanes=4, planes=8, kernel_size=3, padding=2, dilation=2, BatchNorm)
    N, Cin, H, W = 2, 4, 16, 16
    Cout, K = 8, 3
    padding = dilation = 2

    key = jax.random.PRNGKey(0)
    kx, kw = jax.random.split(key)
    x = jax.random.normal(kx, (N, Cin, H, W), dtype=jnp.float32)

    # kaiming_normal_ (fan_in mode, ReLU gain): std = sqrt(2 / (Cin * K * K))
    fan_in = Cin * K * K
    weight = jax.random.normal(kw, (Cout, Cin, K, K), dtype=jnp.float32) \
        * jnp.sqrt(2.0 / fan_in)

    # BatchNorm params as in _init_weight (eval-mode stats: mean=0, var=1)
    bn_gamma = jnp.ones((Cout,), jnp.float32)
    bn_beta = jnp.zeros((Cout,), jnp.float32)
    bn_mean = jnp.zeros((Cout,), jnp.float32)
    bn_var = jnp.ones((Cout,), jnp.float32)

    out = aspp_module_forward(x, weight, bn_gamma, bn_beta, bn_mean, bn_var,
                              dilation=dilation, padding=padding)
    out = jax.block_until_ready(out)
    assert out.shape == (N, Cout, H, W)

    # The kernel feeds the MXU bf16 operands (f32 accumulation), so compare
    # against an f32 reference conv evaluated on the same bf16-rounded inputs.
    x_q = x.astype(jnp.bfloat16).astype(jnp.float32)
    w_q = weight.astype(jnp.bfloat16).astype(jnp.float32)
    ref = _reference(x_q, w_q, bn_gamma, bn_beta, bn_mean, bn_var,
                     dilation=dilation, padding=padding)
    assert jnp.allclose(out, ref, atol=2e-3, rtol=2e-3), "mismatch vs conv reference"

    print("KERNEL_OK")
</pallas_src>

<mosaic_0001>
module attributes {stable_mosaic.version = 11 : i64} {
  func.func @_aspp_kernel(%arg0: i32, %arg1: i32, %arg2: memref<1x320x12xbf16, #tpu.memory_space<vmem>>, %arg3: memref<1x12x128xbf16, #tpu.memory_space<vmem>>, %arg4: memref<1x128xf32, #tpu.memory_space<vmem>>, %arg5: memref<1x128xf32, #tpu.memory_space<vmem>>, %arg6: memref<1x256x128xf32, #tpu.memory_space<vmem>>, %arg7: memref<256x128xf32, #tpu.memory_space<vmem>>) attributes {dimension_semantics = [#tpu.dimension_semantics<parallel>, #tpu.dimension_semantics<arbitrary>], iteration_bounds = array<i64: 2, 3>, scalar_prefetch = 0 : i64, scratch_operands = 1 : i64, tpu.core_type = #tpu.core_type<tc>, window_params = [{transform_indices = @transform_0, window_bounds = array<i64: 1, 320, 12>}, {transform_indices = @transform_1, window_bounds = array<i64: 1, 12, 128>}, {pipeline_mode = #tpu.pipeline_mode<synchronous>, transform_indices = @transform_2, window_bounds = array<i64: 1, 128>}, {pipeline_mode = #tpu.pipeline_mode<synchronous>, transform_indices = @transform_3, window_bounds = array<i64: 1, 128>}, {transform_indices = @transform_4, window_bounds = array<i64: 1, 256, 128>}]} {
    %c0_i32 = arith.constant 0 : i32
    %0 = arith.cmpi eq, %arg1, %c0_i32 : i32
    %1 = arith.extui %0 : i1 to i32
    %c0_i32_0 = arith.constant 0 : i32
    %2 = arith.cmpi ne, %1, %c0_i32_0 : i32
    scf.if %2 {
      %cst_10 = arith.constant 0.000000e+00 : f32
      %17 = vector.broadcast %cst_10 : f32 to vector<256x128xf32>
      %c0_11 = arith.constant 0 : index
      %c0_12 = arith.constant 0 : index
      %18 = vector.load %arg7[%c0_11, %c0_12] : memref<256x128xf32, #tpu.memory_space<vmem>>, vector<256x128xf32>
      tpu.vector_store %arg7[%c0_11, %c0_12], %17 {strides = array<i32>} : memref<256x128xf32, #tpu.memory_space<vmem>>, vector<256x128xf32>,
    } else {
    }
    %c32_i32 = arith.constant 32 : i32
    %3 = arith.muli %arg1, %c32_i32 : i32
    %4 = tpu.assume_multiple %3, 32 : i32
    %c0 = arith.constant 0 : index
    %5 = arith.index_cast %4 : i32 to index
    %c0_1 = arith.constant 0 : index
    %6 = vector.load %arg2[%c0, %5, %c0_1] : memref<1x320x12xbf16, #tpu.memory_space<vmem>>, vector<1x256x12xbf16>
    %7 = vector.shape_cast %6 : vector<1x256x12xbf16> to vector<256x12xbf16>
    %c0_2 = arith.constant 0 : index
    %c0_3 = arith.constant 0 : index
    %8 = vector.load %arg7[%c0_2, %c0_3] : memref<256x128xf32, #tpu.memory_space<vmem>>, vector<256x128xf32>
    %c0_4 = arith.constant 0 : index
    %c0_5 = arith.constant 0 : index
    %c0_6 = arith.constant 0 : index
    %9 = vector.load %arg3[%c0_4, %c0_5, %c0_6] : memref<1x12x128xbf16, #tpu.memory_space<vmem>>, vector<1x12x128xbf16>
    %10 = vector.shape_cast %9 : vector<1x12x128xbf16> to vector<12x128xbf16>
    %cst = arith.constant dense<0.000000e+00> : vector<256x128xf32>
    %11 = tpu.matmul %7, %10, %cst {dimension_numbers = #tpu.dot_dimension_numbers<[1], [0], [0], [1], [0, 0, 1, 1], [], []>} : vector<256x12xbf16>, vector<12x128xbf16>, vector<256x128xf32> -> vector<256x128xf32>
    %12 = arith.addf %8, %11 : vector<256x128xf32>
    %c0_7 = arith.constant 0 : index
    %c0_8 = arith.constant 0 : index
    %13 = vector.load %arg7[%c0_7, %c0_8] : memref<256x128xf32, #tpu.memory_space<vmem>>, vector<256x128xf32>
    tpu.vector_store %arg7[%c0_7, %c0_8], %12 {strides = array<i32>} : memref<256x128xf32, #tpu.memory_space<vmem>>, vector<256x128xf32>,
    %c2_i32 = arith.constant 2 : i32
    %14 = arith.cmpi eq, %arg1, %c2_i32 : i32
    %15 = arith.extui %14 : i1 to i32
    %c0_i32_9 = arith.constant 0 : i32
    %16 = arith.cmpi ne, %15, %c0_i32_9 : i32
    scf.if %16 {
      %c0_10 = arith.constant 0 : index
      %c0_11 = arith.constant 0 : index
      %17 = vector.load %arg7[%c0_10, %c0_11] : memref<256x128xf32, #tpu.memory_space<vmem>>, vector<256x128xf32>
      %c0_12 = arith.constant 0 : index
      %c0_13 = arith.constant 0 : index
      %18 = vector.load %arg4[%c0_12, %c0_13] : memref<1x128xf32, #tpu.memory_space<vmem>>, vector<1x128xf32>
      %19 = vector.broadcast %18 : vector<1x128xf32> to vector<256x128xf32>
      %20 = arith.mulf %17, %19 : vector<256x128xf32>
      %c0_14 = arith.constant 0 : index
      %c0_15 = arith.constant 0 : index
      %21 = vector.load %arg5[%c0_14, %c0_15] : memref<1x128xf32, #tpu.memory_space<vmem>>, vector<1x128xf32>
      %22 = vector.broadcast %21 : vector<1x128xf32> to vector<256x128xf32>
      %23 = arith.addf %20, %22 : vector<256x128xf32>
      %cst_16 = arith.constant 0.000000e+00 : f32
      %24 = vector.broadcast %cst_16 : f32 to vector<256x128xf32>
      %25 = arith.maximumf %23, %24 : vector<256x128xf32>
      %c0_17 = arith.constant 0 : index
      %c0_18 = arith.constant 0 : index
      %c0_19 = arith.constant 0 : index
      %26 = vector.load %arg6[%c0_17, %c0_18, %c0_19] : memref<1x256x128xf32, #tpu.memory_space<vmem>>, vector<1x256x128xf32>
      %27 = vector.shape_cast %26 : vector<1x256x128xf32> to vector<256x128xf32>
      %28 = vector.shape_cast %25 : vector<256x128xf32> to vector<1x256x128xf32>
      tpu.vector_store %arg6[%c0_17, %c0_18, %c0_19], %28 {strides = array<i32>} : memref<1x256x128xf32, #tpu.memory_space<vmem>>, vector<1x256x128xf32>,
    } else {
    }
    return
  }
  func.func @transform_0(%arg0: i32, %arg1: i32) -> (i32, i32, i32) {
    %c0_i32 = arith.constant 0 : i32
    %c0_i32_0 = arith.constant 0 : i32
    %c0_i32_1 = arith.constant 0 : i32
    return %arg0, %c0_i32, %c0_i32_0 : i32, i32, i32
  }
  func.func @transform_1(%arg0: i32, %arg1: i32) -> (i32, i32, i32) {
    %c0_i32 = arith.constant 0 : i32
    %c0_i32_0 = arith.constant 0 : i32
    %c0_i32_1 = arith.constant 0 : i32
    return %arg1, %c0_i32, %c0_i32_0 : i32, i32, i32
  }
  func.func @transform_2(%arg0: i32, %arg1: i32) -> (i32, i32) {
    %c0_i32 = arith.constant 0 : i32
    %c0_i32_0 = arith.constant 0 : i32
    %c0_i32_1 = arith.constant 0 : i32
    return %c0_i32, %c0_i32_0 : i32, i32
  }
  func.func @transform_3(%arg0: i32, %arg1: i32) -> (i32, i32) {
    %c0_i32 = arith.constant 0 : i32
    %c0_i32_0 = arith.constant 0 : i32
    %c0_i32_1 = arith.constant 0 : i32
    return %c0_i32, %c0_i32_0 : i32, i32
  }
  func.func @transform_4(%arg0: i32, %arg1: i32) -> (i32, i32, i32) {
    %c0_i32 = arith.constant 0 : i32
    %c0_i32_0 = arith.constant 0 : i32
    %c0_i32_1 = arith.constant 0 : i32
    return %arg0, %c0_i32, %c0_i32_0 : i32, i32, i32
  }
}

</mosaic_0001>

<bundles_post_ra>
// kernel: tpu_custom_call.1
= control target key start
LH: loop header
LB: loop body
LE: loop exit
PB: predicated region body
PF: predicated region fallthrough
CT: control target
= control target key end

     0   :  { %9 = vsyncpa [#allocation4], 0  ;;  %s1601_s0 = inlined_call_operand.vmem [shape: bf16[2,320,12], index: 0, kind: input, shape index: {}]   ;;  %s1602_s1 = inlined_call_operand.vmem [shape: bf16[3,12,128], index: 1, kind: input, shape index: {}]   ;;  %s1603_s2 = inlined_call_operand.vmem [shape: f32[1,128], index: 2, kind: input, shape index: {}]   ;;  %s1604_s3 = inlined_call_operand.vmem [shape: f32[1,128], index: 3, kind: input, shape index: {}]   ;;  %s1605_s4 = inlined_call_operand.hbm [shape: f32[2,256,128], index: 4, kind: output, shape index: {}]  }
   0x1   :  { %11 = vsyncpa [#allocation4 + $0x1], 0  ;;  %s1305_s15 = smov 0   ;;  %s1307_s16 = smov 0  }
   0x2   :  { %s1309_s17 = smov 0   ;;  %s1311_s18 = smov 0  }
   0x3   :  { %s1313_s19 = smov 0   ;;  %s1315_s20 = smov 0  }
   0x4   :  { %s1317_s21 = smov 0   ;;  %s1319_s22 = smov 0  }
   0x5 LB: > { %s978_s23 = sadd.s32 4294967295, %s1274_s22   ;;  %s979_s24 = sadd.s32 4294967294, %s1274_s22   ;;  %s1274_s22 = sphi %s1319_s22, %s17_s22   ;;  %s1270_s21 = sphi %s1317_s21, %s1614_s21   ;;  %s1266_s20 = sphi %s1315_s20, %s1613_s20   ;;  %s1262_s19 = sphi %s1313_s19, %s1612_s19   ;;  %s1258_s18 = sphi %s1311_s18, %s1611_s18   ;;  %s1254_s17 = sphi %s1309_s17, %s1610_s17   ;;  %s1250_s16 = sphi %s1307_s16, %s1609_s16   ;;  %s1246_s15 = sphi %s1305_s15, %s1608_s15  }
   0x6   : > { %s26_s25 = sadd.s32 1, %s1266_s20  ;;  %s29_s26 = sadd.s32 1, %s1270_s21 }
   0x7   : > { %p27_p0 = scmp.ge.s32.totalorder %s26_s25, 3  ;;  %p140_p1 = scmp.ne.s32.totalorder %s1254_s17, %s1250_s16 }
   0x8   : > { %p141_p2 = scmp.eq.s32.totalorder %s978_s23, 5  ;;  %p146_p4 = scmp.ne.s32.totalorder %s1250_s16, %s1246_s15 }
   0x9   : > { %s1616_s25 = smov (%p27_p0, %s26_s25), 0  ;;  %s1618_s26 = smov (!%p27_p0, %s29_s26), %s1270_s21 }
   0xa   : > { %p1354_p3 = por %p141_p2, %p140_p1  ;;  %p31_p5 = scmp.ge.s32.totalorder %s1618_s26, 2 }
   0xb   : > { %p147_p6 = scmp.eq.s32.totalorder %s979_s24, 5  ;;  %p982_p7 = scmp.ge.s32.totalorder %s1274_s22, 1 }
   0xc   : > { %p187_p8 = scmp.lt.s32.totalorder %s1274_s22, 7  ;;  %s1620_s26 = smov (%p31_p5, %s1618_s26), 0 }
   0xd   : > { %p1364_p9 = por %p147_p6, %p146_p4  ;;  %s127_s29 = ssub.s32 %s1270_s21, %s1620_s26 }
   0xe   : > { %p188_p10 = pnand %p982_p7, %p187_p8  ;;  %s130_s30 = sadd.s32 1, %s1254_s17 }
   0xf   : > { %p128_p11 = scmp.eq.s32.totalorder %s127_s29, 0  ;;  %s215_s6 = sand.u32 (!%p188_p10), 1, %s1250_s16  }
  0x10   : > { %191 = sbr.rel (%p188_p10) target bundleno = 333 (0x14d), region = 36  ;;  %p218_p12 = scmp.lt.s32.totalorder (!%p188_p10), %s1262_s19, 1 }
  0x11   : > { %s1372_s5 = scalar_select %p128_p11, %s1254_s17, %s130_s30  }
  0x12   : > { %s983_s7 = sshll.u32 (!%p188_p10), %s215_s6, 8  ;;  %p223_p13 = scmp.lt.s32.totalorder (!%p188_p10), %s1258_s18, 2 }
  0x13   : > { %s1391_s30 = scalar_lea.vmem (!%p188_p10), [#allocation3], %s983_s7  ;;  %p987_p0 = scmp.ne.s32.totalorder (!%p188_p10), %s1258_s18, 0 }
  0x17   : > { %s219_s8 = scalar_select %p218_p12, %s1262_s19, 1 }
  0x18   : > { %s224_s9 = scalar_select %p223_p13, %s1258_s18, 2 }
  0x19   : > { %s1088_s10 = smul.u32 160, %s219_s8  ;;  %v1276_v0 = vmov (!%p987_p0), 0.0  }
  0x1a   : > { %s1031_s11 = sshll.u32 %s224_s9, 3  ;;  %232 = sbr.rel (%p987_p0) target bundleno = 42 (0x2a), region = 40  ;;  %233 = vst [vmem:[#allocation2] sm:$0xff] (!%p987_p0), %v1276_v0  ;;  %234 = vst [vmem:[#allocation2 + $0x8] sm:$0xff] (!%p987_p0), %v1276_v0 }
  0x1b   : > { %s1384_s14 = scalar_lea.vmem %s1601_s0, %s1088_s10  ;;  %s1389_s29 = scalar_lea.vmem %s1602_s1, %s1031_s11  ;;  %235 = vst [vmem:[#allocation2 + $0x10] sm:$0xff] (!%p987_p0), %v1276_v0  ;;  %236 = vst [vmem:[#allocation2 + $0x18] sm:$0xff] (!%p987_p0), %v1276_v0 }
  0x1c   : > { %237 = vst [vmem:[#allocation2 + $0x20] sm:$0xff] (!%p987_p0), %v1276_v0  ;;  %238 = vst [vmem:[#allocation2 + $0x28] sm:$0xff] (!%p987_p0), %v1276_v0 }
  0x1d   : > { %239 = vst [vmem:[#allocation2 + $0x30] sm:$0xff] (!%p987_p0), %v1276_v0  ;;  %240 = vst [vmem:[#allocation2 + $0x38] sm:$0xff] (!%p987_p0), %v1276_v0 }
  0x1e   : > { %241 = vst [vmem:[#allocation2 + $0x40] sm:$0xff] (!%p987_p0), %v1276_v0  ;;  %242 = vst [vmem:[#allocation2 + $0x48] sm:$0xff] (!%p987_p0), %v1276_v0 }
  0x1f   : > { %243 = vst [vmem:[#allocation2 + $0x50] sm:$0xff] (!%p987_p0), %v1276_v0  ;;  %244 = vst [vmem:[#allocation2 + $0x58] sm:$0xff] (!%p987_p0), %v1276_v0 }
  0x20   : > { %245 = vst [vmem:[#allocation2 + $0x60] sm:$0xff] (!%p987_p0), %v1276_v0  ;;  %246 = vst [vmem:[#allocation2 + $0x68] sm:$0xff] (!%p987_p0), %v1276_v0 }
  0x21   : > { %247 = vst [vmem:[#allocation2 + $0x70] sm:$0xff] %v1276_v0  ;;  %248 = vst [vmem:[#allocation2 + $0x78] sm:$0xff] %v1276_v0 }
  0x22   : > { %249 = vst [vmem:[#allocation2 + $0x80] sm:$0xff] %v1276_v0  ;;  %250 = vst [vmem:[#allocation2 + $0x88] sm:$0xff] %v1276_v0 }
  0x23   : > { %251 = vst [vmem:[#allocation2 + $0x90] sm:$0xff] %v1276_v0  ;;  %252 = vst [vmem:[#allocation2 + $0x98] sm:$0xff] %v1276_v0 }
  0x24   : > { %253 = vst [vmem:[#allocation2 + $0xa0] sm:$0xff] %v1276_v0  ;;  %254 = vst [vmem:[#allocation2 + $0xa8] sm:$0xff] %v1276_v0 }
  0x25   : > { %255 = vst [vmem:[#allocation2 + $0xb0] sm:$0xff] %v1276_v0  ;;  %256 = vst [vmem:[#allocation2 + $0xb8] sm:$0xff] %v1276_v0 }
  0x26   : > { %257 = vst [vmem:[#allocation2 + $0xc0] sm:$0xff] %v1276_v0  ;;  %258 = vst [vmem:[#allocation2 + $0xc8] sm:$0xff] %v1276_v0 }
  0x27   : > { %259 = vst [vmem:[#allocation2 + $0xd0] sm:$0xff] %v1276_v0  ;;  %260 = vst [vmem:[#allocation2 + $0xd8] sm:$0xff] %v1276_v0 }
  0x28   : > { %261 = vst [vmem:[#allocation2 + $0xe0] sm:$0xff] %v1276_v0  ;;  %262 = vst [vmem:[#allocation2 + $0xe8] sm:$0xff] %v1276_v0 }
  0x29   : > { %263 = vst [vmem:[#allocation2 + $0xf0] sm:$0xff] %v1276_v0  ;;  %264 = vst [vmem:[#allocation2 + $0xf8] sm:$0xff] %v1276_v0 }
  0x2a PF: > { %v1163_v1 = vld [vmem:[%s1389_s29] sm:$0x3f]   ;;  %vm470_vm0 = vcmask 1045504   ;;  %s988_s7 = sshll.u32 %s1258_s18, 5  ;;  %vm421_vm1 = vcmask 97280   ;;  %v320_v20 = vld [vmem:[#allocation2 + $0x90] sm:$0xff] }
  0x2b   : > { %1086 = vmatprep.subr.msk.bf16.mxu0 %vm470_vm0, %v1163_v1  ;;  %1087 = vmatprep.subr.msk.bf16.mxu1 %vm470_vm0, %v1163_v1  ;;  %v472_v2 = vsel %vm470_vm0, %v1163_v1, 0  ;;  %s266_s8 = sshra.s32 %s988_s7, 3  ;;  %v304_v19 = vld [vmem:[#allocation2 + $0x10] sm:$0xff]  ;;  %v302_v21 = vld [vmem:[#allocation2] sm:$0xff]  ;;  %v305_v24 = vld [vmem:[#allocation2 + $0x18] sm:$0xff]  ;;  %p1023_p1 = scmp.ne.s32.totalorder %s1258_s18, 2 }
  0x2c   : > { %1051 = vmatpush3.bf16.msra.mxu0 %v472_v2  ;;  %1085 = vmatpush3.bf16.msra.mxu1 %v472_v2  ;;  %s989_s9 = sshll.u32 %s266_s8, 2  ;;  %v318_v23 = vld [vmem:[#allocation2 + $0x80] sm:$0xff]  ;;  %v321_v28 = vld [vmem:[#allocation2 + $0x98] sm:$0xff]  ;;  %v303_v29 = vld [vmem:[#allocation2 + $0x8] sm:$0xff] }
  0x2d   : > { %s1397_s10 = scalar_lea.vmem %s1384_s14, %s989_s9  ;;  %v319_v34 = vld [vmem:[#allocation2 + $0x88] sm:$0xff]  ;;  %v308_v43 = vld [vmem:[#allocation2 + $0x30] sm:$0xff]  ;;  %v306_v45 = vld [vmem:[#allocation2 + $0x20] sm:$0xff] }
  0x2e   : > { %v1164_v3 = vld [vmem:[%s1397_s10] sm:$0xff]   ;;  %v1166_v5 = vld [vmem:[%s1397_s10 + $0x8] sm:$0xff]   ;;  %v1168_v7 = vld [vmem:[%s1397_s10 + $0x10] sm:$0xff]  }
  0x2f   : > { %v1165_v4 = vld [vmem:[%s1397_s10 + $0x40] sm:$0xff]   ;;  %1052 = vmatprep.mubr.msk.bf16.mxu0 %vm421_vm1, %v1164_v3  ;;  %v1167_v6 = vld [vmem:[%s1397_s10 + $0x48] sm:$0xff]   ;;  %v1169_v8 = vld [vmem:[%s1397_s10 + $0x50] sm:$0xff]  }
  0x30   : > { %1068 = vmatprep.mubr.msk.bf16.mxu1 %vm421_vm1, %v1165_v4  ;;  %1053 = vmatmul.mubr.msk.bf16.vlgmr.msra.gmra.mrb[0].mxu0 %vm421_vm1, %v1166_v5  ;;  %v1170_v9 = vld [vmem:[%s1397_s10 + $0x18] sm:$0xff]   ;;  %v1172_v11 = vld [vmem:[%s1397_s10 + $0x20] sm:$0xff]   ;;  %v1174_v13 = vld [vmem:[%s1397_s10 + $0x28] sm:$0xff]  }
  0x31   : > { %1069 = vmatmul.mubr.msk.bf16.vlgmr.msra.gmra.mrb[0].mxu1 %vm421_vm1, %v1167_v6  ;;  %1056 = vmatprep.mubr.msk.bf16.mxu0 %vm421_vm1, %v1168_v7  ;;  %v1171_v10 = vld [vmem:[%s1397_s10 + $0x58] sm:$0xff]   ;;  %v1173_v12 = vld [vmem:[%s1397_s10 + $0x60] sm:$0xff]   ;;  %v1175_v14 = vld [vmem:[%s1397_s10 + $0x68] sm:$0xff]  }
  0x32   : > { %1072 = vmatprep.mubr.msk.bf16.mxu1 %vm421_vm1, %v1169_v8  ;;  %v1176_v15 = vld [vmem:[%s1397_s10 + $0x30] sm:$0xff]   ;;  %v1178_v17 = vld [vmem:[%s1397_s10 + $0x38] sm:$0xff]   ;;  %v322_v47 = vld [vmem:[#allocation2 + $0xa0] sm:$0xff] }
  0x33   : > { %v1177_v16 = vld [vmem:[%s1397_s10 + $0x70] sm:$0xff]   ;;  %v1179_v18 = vld [vmem:[%s1397_s10 + $0x78] sm:$0xff]   ;;  %v307_v53 = vld [vmem:[#allocation2 + $0x28] sm:$0xff] }
  0x34   : > { %v324_v44 = vld [vmem:[#allocation2 + $0xb0] sm:$0xff]  ;;  %v309_v48 = vld [vmem:[#allocation2 + $0x38] sm:$0xff]  ;;  %v323_v58 = vld [vmem:[#allocation2 + $0xa8] sm:$0xff] }
  0x35   : > { %v325_v52 = vld [vmem:[#allocation2 + $0xb8] sm:$0xff]  ;;  %v312_v3 = vld [vmem:[#allocation2 + $0x50] sm:$0xff]  ;;  %v310_v5 = vld [vmem:[#allocation2 + $0x40] sm:$0xff] }
  0x36   : > { %v328_v4 = vld [vmem:[#allocation2 + $0xd0] sm:$0xff]  ;;  %v326_v7 = vld [vmem:[#allocation2 + $0xc0] sm:$0xff]  ;;  %v313_v8 = vld [vmem:[#allocation2 + $0x58] sm:$0xff] }
  0x38   : > { %1057 = vmatmul.mubr.msk.bf16.gmra.mrb[4].mxu0 %vm421_vm1, %v1170_v9 }
  0x39   : > { %1073 = vmatmul.mubr.msk.bf16.gmra.mrb[4].mxu1 %vm421_vm1, %v1171_v10  ;;  %1060 = vmatprep.mubr.msk.bf16.mxu0 %vm421_vm1, %v1172_v11 }
  0x3a   : > { %1076 = vmatprep.mubr.msk.bf16.mxu1 %vm421_vm1, %v1173_v12  ;;  %v329_v12 = vld [vmem:[#allocation2 + $0xd8] sm:$0xff] }
  0x40   : > { %1061 = vmatmul.mubr.msk.bf16.gmra.mrb[8].mxu0 %vm421_vm1, %v1174_v13  ;;  %v311_v13 = vld [vmem:[#allocation2 + $0x48] sm:$0xff] }
  0x41   : > { %1077 = vmatmul.mubr.msk.bf16.gmra.mrb[8].mxu1 %vm421_vm1, %v1175_v14  ;;  %1064 = vmatprep.mubr.msk.bf16.mxu0 %vm421_vm1, %v1176_v15 }
  0x42   : > { %1080 = vmatprep.mubr.msk.bf16.mxu1 %vm421_vm1, %v1177_v16 }
  0x48   : > { %1065 = vmatmul.mubr.msk.bf16.gmra.mrb[12].mxu0 %vm421_vm1, %v1178_v17 }
  0x49   : > { %1081 = vmatmul.mubr.msk.bf16.gmra.mrb[12].mxu1 %vm421_vm1, %v1179_v18  ;;  %v327_v18 = vld [vmem:[#allocation2 + $0xc8] sm:$0xff] }
 0x103   : > { %v1054_v22 = vpop.f32.mrb[0].mxu0 }
 0x104   : > { %v637_v25 = vadd.f32 %v1054_v22, %v304_v19  ;;  %v1070_v26 = vpop.f32.mrb[0].mxu1  ;;  %v508_v27 = vpop.f32.mrb[1].mxu0 }
 0x105   : > { %v653_v30 = vadd.f32 %v1070_v26, %v320_v20  ;;  %v635_v31 = vadd.f32 %v508_v27, %v302_v21  ;;  %v572_v32 = vpop.f32.mrb[1].mxu1  ;;  %v1055_v33 = vpop.f32.mrb[2].mxu0  ;;  %v316_v27 = vld [vmem:[#allocation2 + $0x70] sm:$0xff] }
 0x106   : > { %669 = vst [vmem:[#allocation2 + $0x10] sm:$0xff] %v637_v25  ;;  %v651_v35 = vadd.f32 %v572_v32, %v318_v23  ;;  %v638_v36 = vadd.f32 %v1055_v33, %v305_v24  ;;  %v1071_v37 = vpop.f32.mrb[2].mxu1  ;;  %v511_v38 = vpop.f32.mrb[3].mxu0  ;;  %v317_v32 = vld [vmem:[#allocation2 + $0x78] sm:$0xff] }
 0x107   : > { %685 = vst [vmem:[#allocation2 + $0x90] sm:$0xff] %v653_v30  ;;  %667 = vst [vmem:[#allocation2] sm:$0xff] %v635_v31  ;;  %v654_v39 = vadd.f32 %v1071_v37, %v321_v28  ;;  %v636_v40 = vadd.f32 %v511_v38, %v303_v29  ;;  %v575_v41 = vpop.f32.mrb[3].mxu1  ;;  %v332_v28 = vld [vmem:[#allocation2 + $0xf0] sm:$0xff]  ;;  %v314_v29 = vld [vmem:[#allocation2 + $0x60] sm:$0xff] }
 0x108   : > { %683 = vst [vmem:[#allocation2 + $0x80] sm:$0xff] %v651_v35  ;;  %670 = vst [vmem:[#allocation2 + $0x18] sm:$0xff] %v638_v36  ;;  %v652_v42 = vadd.f32 %v575_v41, %v319_v34  ;;  %v330_v31 = vld [vmem:[#allocation2 + $0xe0] sm:$0xff]  ;;  %v333_v36 = vld [vmem:[#allocation2 + $0xf8] sm:$0xff] }
 0x109   : > { %686 = vst [vmem:[#allocation2 + $0x98] sm:$0xff] %v654_v39  ;;  %668 = vst [vmem:[#allocation2 + $0x8] sm:$0xff] %v636_v40  ;;  %v315_v37 = vld [vmem:[#allocation2 + $0x68] sm:$0xff] }
 0x10a   : > { %684 = vst [vmem:[#allocation2 + $0x88] sm:$0xff] %v652_v42  ;;  %v331_v42 = vld [vmem:[#allocation2 + $0xe8] sm:$0xff] }
 0x10b   : > { %v1058_v46 = vpop.f32.mrb[4].mxu0 }
 0x10c   : > { %v641_v49 = vadd.f32 %v1058_v46, %v308_v43  ;;  %v1074_v50 = vpop.f32.mrb[4].mxu1  ;;  %v524_v51 = vpop.f32.mrb[5].mxu0 }
 0x10d   : > { %v657_v54 = vadd.f32 %v1074_v50, %v324_v44  ;;  %v639_v55 = vadd.f32 %v524_v51, %v306_v45  ;;  %v588_v56 = vpop.f32.mrb[5].mxu1  ;;  %v1059_v57 = vpop.f32.mrb[6].mxu0 }
 0x10e   : > { %673 = vst [vmem:[#allocation2 + $0x30] sm:$0xff] %v641_v49  ;;  %v655_v59 = vadd.f32 %v588_v56, %v322_v47  ;;  %v642_v60 = vadd.f32 %v1059_v57, %v309_v48  ;;  %v1075_v61 = vpop.f32.mrb[6].mxu1  ;;  %v527_v62 = vpop.f32.mrb[7].mxu0  ;;  %v703_v51 = vld [vmem:[#allocation2] sm:$0xff] (!%p1023_p1)  ;;  %v705_v56 = vld [vmem:[#allocation2 + $0x10] sm:$0xff] (!%p1023_p1) }
 0x10f   : > { %689 = vst [vmem:[#allocation2 + $0xb0] sm:$0xff] %v657_v54  ;;  %671 = vst [vmem:[#allocation2 + $0x20] sm:$0xff] %v639_v55  ;;  %v658_v63 = vadd.f32 %v1075_v61, %v325_v52  ;;  %v640_v0 = vadd.f32 %v527_v62, %v307_v53  ;;  %v591_v1 = vpop.f32.mrb[7].mxu1  ;;  %v1435_v52 = vld [vmem:[%s1603_s2] ss:$0 sm:$0xff] (!%p1023_p1)  ;;  %v706_v57 = vld [vmem:[#allocation2 + $0x18] sm:$0xff] (!%p1023_p1) }
 0x110   : > { %687 = vst [vmem:[#allocation2 + $0xa0] sm:$0xff] %v655_v59  ;;  %674 = vst [vmem:[#allocation2 + $0x38] sm:$0xff] %v642_v60  ;;  %v656_v2 = vadd.f32 %v591_v1, %v323_v58  ;;  %v1440_v53 = vld [vmem:[%s1604_s3] ss:$0 sm:$0xff] (!%p1023_p1)  ;;  %v742_v54 = vmul.f32 (!%p1023_p1), %v1435_v52, %v703_v51  ;;  %v704_v55 = vld [vmem:[#allocation2 + $0x8] sm:$0xff] (!%p1023_p1)  ;;  %v744_v59 = vmul.f32 (!%p1023_p1), %v1435_v52, %v705_v56 }
 0x111   : > { %690 = vst [vmem:[#allocation2 + $0xb8] sm:$0xff] %v658_v63  ;;  %672 = vst [vmem:[#allocation2 + $0x28] sm:$0xff] %v640_v0  ;;  %v743_v58 = vmul.f32 (!%p1023_p1), %v1435_v52, %v704_v55  ;;  %v745_v60 = vmul.f32 (!%p1023_p1), %v1435_v52, %v706_v57 }
 0x112   : > { %688 = vst [vmem:[#allocation2 + $0xa8] sm:$0xff] %v656_v2  ;;  %v781_v0 = vadd.f32 (!%p1023_p1), %v1440_v53, %v742_v54 }
 0x113   : > { %v1062_v6 = vpop.f32.mrb[8].mxu0 }
 0x114   : > { %v645_v9 = vadd.f32 %v1062_v6, %v312_v3  ;;  %v1078_v10 = vpop.f32.mrb[8].mxu1  ;;  %v540_v11 = vpop.f32.mrb[9].mxu0  ;;  %v783_v6 = vadd.f32 (!%p1023_p1), %v1440_v53, %v744_v59 }
 0x115   : > { %v661_v14 = vadd.f32 %v1078_v10, %v328_v4  ;;  %v643_v15 = vadd.f32 %v540_v11, %v310_v5  ;;  %v604_v16 = vpop.f32.mrb[9].mxu1  ;;  %v1063_v17 = vpop.f32.mrb[10].mxu0  ;;  %v709_v63 = vld [vmem:[#allocation2 + $0x30] sm:$0xff] (!%p1023_p1)  ;;  %v782_v5 = vadd.f32 (!%p1023_p1), %v1440_v53, %v743_v58  ;;  %v813_v10 = vmax.f32 (!%p1023_p1), %v781_v0, 0.0 }
 0x116   : > { %677 = vst [vmem:[#allocation2 + $0x50] sm:$0xff] %v645_v9  ;;  %v659_v19 = vadd.f32 %v604_v16, %v326_v7  ;;  %v646_v20 = vadd.f32 %v1063_v17, %v313_v8  ;;  %v1079_v21 = vpop.f32.mrb[10].mxu1  ;;  %v543_v22 = vpop.f32.mrb[11].mxu0  ;;  %v707_v61 = vld [vmem:[#allocation2 + $0x20] sm:$0xff] (!%p1023_p1)  ;;  %v748_v3 = vmul.f32 (!%p1023_p1), %v1435_v52, %v709_v63  ;;  %v784_v7 = vadd.f32 (!%p1023_p1), %v1440_v53, %v745_v60  ;;  %v725_v57 = vld [vmem:[#allocation2 + $0xb0] sm:$0xff] (!%p1023_p1) }
 0x117   : > { %693 = vst [vmem:[#allocation2 + $0xd0] sm:$0xff] %v661_v14  ;;  %675 = vst [vmem:[#allocation2 + $0x40] sm:$0xff] %v643_v15  ;;  %v662_v23 = vadd.f32 %v1079_v21, %v329_v12  ;;  %v644_v24 = vadd.f32 %v543_v22, %v311_v13  ;;  %v607_v25 = vpop.f32.mrb[11].mxu1  ;;  %v746_v1 = vmul.f32 (!%p1023_p1), %v1435_v52, %v707_v61  ;;  %v710_v4 = vld [vmem:[#allocation2 + $0x38] sm:$0xff] (!%p1023_p1)  ;;  %v814_v17 = vmax.f32 (!%p1023_p1), %v782_v5, 0.0  ;;  %v723_v55 = vld [vmem:[#allocation2 + $0xa0] sm:$0xff] (!%p1023_p1) }
 0x118   : > { %691 = vst [vmem:[#allocation2 + $0xc0] sm:$0xff] %v659_v19  ;;  %678 = vst [vmem:[#allocation2 + $0x58] sm:$0xff] %v646_v20  ;;  %v660_v26 = vadd.f32 %v607_v25, %v327_v18  ;;  %v708_v62 = vld [vmem:[#allocation2 + $0x28] sm:$0xff] (!%p1023_p1)  ;;  %v749_v8 = vmul.f32 (!%p1023_p1), %v1435_v52, %v710_v4  ;;  %v787_v13 = vadd.f32 (!%p1023_p1), %v1440_v53, %v748_v3  ;;  %v815_v18 = vmax.f32 (!%p1023_p1), %v783_v6, 0.0 }
 0x119   : > { %694 = vst [vmem:[#allocation2 + $0xd8] sm:$0xff] %v662_v23  ;;  %676 = vst [vmem:[#allocation2 + $0x48] sm:$0xff] %v644_v24  ;;  %v747_v2 = vmul.f32 (!%p1023_p1), %v1435_v52, %v708_v62  ;;  %v785_v11 = vadd.f32 (!%p1023_p1), %v1440_v53, %v746_v1  ;;  %v816_v19 = vmax.f32 (!%p1023_p1), %v784_v7, 0.0  ;;  %v724_v56 = vld [vmem:[#allocation2 + $0xa8] sm:$0xff] (!%p1023_p1)  ;;  %v726_v62 = vld [vmem:[#allocation2 + $0xb8] sm:$0xff] (!%p1023_p1)  ;;  %v762_v4 = vmul.f32 (!%p1023_p1), %v1435_v52, %v723_v55 }
 0x11a   : > { %692 = vst [vmem:[#allocation2 + $0xc8] sm:$0xff] %v660_v26  ;;  %v788_v20 = vadd.f32 (!%p1023_p1), %v1440_v53, %v749_v8  ;;  %845 = vst [vmem:[%s1391_s30] sm:$0xff] (!%p1023_p1), %v813_v10  ;;  %v819_v26 = vmax.f32 (!%p1023_p1), %v787_v13, 0.0  ;;  %v763_v5 = vmul.f32 (!%p1023_p1), %v1435_v52, %v724_v56  ;;  %v764_v6 = vmul.f32 (!%p1023_p1), %v1435_v52, %v725_v57 }
 0x11b   : > { %v1066_v30 = vpop.f32.mrb[12].mxu0  ;;  %v786_v12 = vadd.f32 (!%p1023_p1), %v1440_v53, %v747_v2  ;;  %v817_v24 = vmax.f32 (!%p1023_p1), %v785_v11, 0.0  ;;  %846 = vst [vmem:[%s1391_s30 + $0x8] sm:$0xff] (!%p1023_p1), %v814_v17  ;;  %847 = vst [vmem:[%s1391_s30 + $0x10] sm:$0xff] (!%p1023_p1), %v815_v18  ;;  %v765_v10 = vmul.f32 (!%p1023_p1), %v1435_v52, %v726_v62  ;;  %v801_v13 = vadd.f32 (!%p1023_p1), %v1440_v53, %v762_v4 }
 0x11c   : > { %v649_v33 = vadd.f32 %v1066_v30, %v316_v27  ;;  %v1082_v34 = vpop.f32.mrb[12].mxu1  ;;  %v556_v35 = vpop.f32.mrb[13].mxu0  ;;  %702 = sbr.rel (%p1023_p1) target bundleno = 308 (0x134), region = 44  ;;  %848 = vst [vmem:[%s1391_s30 + $0x18] sm:$0xff] (!%p1023_p1), %v816_v19  ;;  %851 = vst [vmem:[%s1391_s30 + $0x30] sm:$0xff] (!%p1023_p1), %v819_v26 }
 0x11d   : > { %v665_v38 = vadd.f32 %v1082_v34, %v332_v28  ;;  %v647_v39 = vadd.f32 %v556_v35, %v314_v29  ;;  %v620_v40 = vpop.f32.mrb[13].mxu1  ;;  %v1067_v41 = vpop.f32.mrb[14].mxu0  ;;  %v713_v15 = vld [vmem:[#allocation2 + $0x50] sm:$0xff] (!%p1023_p1)  ;;  %v818_v25 = vmax.f32 (!%p1023_p1), %v786_v12, 0.0  ;;  %v820_v29 = vmax.f32 (!%p1023_p1), %v788_v20, 0.0  ;;  %849 = vst [vmem:[%s1391_s30 + $0x20] sm:$0xff] (!%p1023_p1), %v817_v24 }
 0x11e   : > { %681 = vst [vmem:[#allocation2 + $0x70] sm:$0xff] %v649_v33  ;;  %v663_v43 = vadd.f32 %v620_v40, %v330_v31  ;;  %v650_v44 = vadd.f32 %v1067_v41, %v317_v32  ;;  %v1083_v45 = vpop.f32.mrb[14].mxu1  ;;  %v559_v46 = vpop.f32.mrb[15].mxu0  ;;  %v711_v9 = vld [vmem:[#allocation2 + $0x40] sm:$0xff] (!%p1023_p1)  ;;  %v752_v31 = vmul.f32 (!%p1023_p1), %v1435_v52, %v713_v15  ;;  %v803_v15 = vadd.f32 (!%p1023_p1), %v1440_v53, %v764_v6  ;;  %v729_v17 = vld [vmem:[#allocation2 + $0xd0] sm:$0xff] (!%p1023_p1) }
 0x11f   : > { %697 = vst [vmem:[#allocation2 + $0xf0] sm:$0xff] %v665_v38  ;;  %679 = vst [vmem:[#allocation2 + $0x60] sm:$0xff] %v647_v39  ;;  %v666_v47 = vadd.f32 %v1083_v45, %v333_v36  ;;  %v648_v48 = vadd.f32 %v559_v46, %v315_v37  ;;  %v623_v49 = vpop.f32.mrb[15].mxu1  ;;  %v714_v16 = vld [vmem:[#allocation2 + $0x58] sm:$0xff] (!%p1023_p1)  ;;  %v750_v27 = vmul.f32 (!%p1023_p1), %v1435_v52, %v711_v9  ;;  %v719_v41 = vld [vmem:[#allocation2 + $0x80] sm:$0xff] (!%p1023_p1)  ;;  %v833_v26 = vmax.f32 (!%p1023_p1), %v801_v13, 0.0 }
 0x120   : > { %695 = vst [vmem:[#allocation2 + $0xe0] sm:$0xff] %v663_v43  ;;  %682 = vst [vmem:[#allocation2 + $0x78] sm:$0xff] %v650_v44  ;;  %v664_v50 = vadd.f32 %v623_v49, %v331_v42  ;;  %v712_v14 = vld [vmem:[#allocation2 + $0x48] sm:$0xff] (!%p1023_p1)  ;;  %v753_v32 = vmul.f32 (!%p1023_p1), %v1435_v52, %v714_v16  ;;  %v791_v38 = vadd.f32 (!%p1023_p1), %v1440_v53, %v752_v31  ;;  %v727_v11 = vld [vmem:[#allocation2 + $0xc0] sm:$0xff] (!%p1023_p1) }
 0x121   : > { %698 = vst [vmem:[#allocation2 + $0xf8] sm:$0xff] %v666_v47  ;;  %680 = vst [vmem:[#allocation2 + $0x68] sm:$0xff] %v648_v48  ;;  %v751_v30 = vmul.f32 (!%p1023_p1), %v1435_v52, %v712_v14  ;;  %v789_v33 = vadd.f32 (!%p1023_p1), %v1440_v53, %v750_v27  ;;  %v720_v46 = vld [vmem:[#allocation2 + $0x88] sm:$0xff] (!%p1023_p1)  ;;  %v721_v47 = vld [vmem:[#allocation2 + $0x90] sm:$0xff] (!%p1023_p1)  ;;  %v758_v61 = vmul.f32 (!%p1023_p1), %v1435_v52, %v719_v41 }
 0x122   : > { %696 = vst [vmem:[#allocation2 + $0xe8] sm:$0xff] %v664_v50  ;;  %850 = vst [vmem:[%s1391_s30 + $0x28] sm:$0xff] (!%p1023_p1), %v818_v25  ;;  %v792_v39 = vadd.f32 (!%p1023_p1), %v1440_v53, %v753_v32  ;;  %v722_v48 = vld [vmem:[#allocation2 + $0x98] sm:$0xff] (!%p1023_p1)  ;;  %v823_v50 = vmax.f32 (!%p1023_p1), %v791_v38, 0.0  ;;  %v759_v0 = vmul.f32 (!%p1023_p1), %v1435_v52, %v720_v46  ;;  %v760_v1 = vmul.f32 (!%p1023_p1), %v1435_v52, %v721_v47  ;;  %v728_v16 = vld [vmem:[#allocation2 + $0xc8] sm:$0xff] (!%p1023_p1) }
 0x123   : > { %852 = vst [vmem:[%s1391_s30 + $0x38] sm:$0xff] %v820_v29  ;;  %v790_v37 = vadd.f32 %v1440_v53, %v751_v30  ;;  %v821_v42 = vmax.f32 %v789_v33, 0.0  ;;  %v761_v2 = vmul.f32 %v1435_v52, %v722_v48  ;;  %v797_v3 = vadd.f32 %v1440_v53, %v758_v61  ;;  %v730_v18 = vld [vmem:[#allocation2 + $0xd8] sm:$0xff]  ;;  %865 = vst [vmem:[%s1391_s30 + $0xa0] sm:$0xff] %v833_v26 }
 0x124   : > { %v824_v51 = vmax.f32 %v792_v39, 0.0  ;;  %855 = vst [vmem:[%s1391_s30 + $0x50] sm:$0xff] %v823_v50  ;;  %v798_v7 = vadd.f32 %v1440_v53, %v759_v0  ;;  %v799_v8 = vadd.f32 %v1440_v53, %v760_v1  ;;  %v802_v14 = vadd.f32 %v1440_v53, %v763_v5 }
 0x125   : > { %v717_v23 = vld [vmem:[#allocation2 + $0x70] sm:$0xff]  ;;  %v822_v49 = vmax.f32 %v790_v37, 0.0  ;;  %853 = vst [vmem:[%s1391_s30 + $0x40] sm:$0xff] %v821_v42  ;;  %v800_v9 = vadd.f32 %v1440_v53, %v761_v2  ;;  %v829_v12 = vmax.f32 %v797_v3, 0.0  ;;  %v766_v29 = vmul.f32 %v1435_v52, %v727_v11 }
 0x126   : > { %v715_v21 = vld [vmem:[#allocation2 + $0x60] sm:$0xff]  ;;  %v756_v36 = vmul.f32 %v1435_v52, %v717_v23  ;;  %856 = vst [vmem:[%s1391_s30 + $0x58] sm:$0xff] %v824_v51  ;;  %v830_v19 = vmax.f32 %v798_v7, 0.0  ;;  %v831_v20 = vmax.f32 %v799_v8, 0.0  ;;  %v733_v25 = vld [vmem:[#allocation2 + $0xf0] sm:$0xff]  ;;  %v834_v27 = vmax.f32 %v802_v14, 0.0 }
 0x127   : > { %v718_v28 = vld [vmem:[#allocation2 + $0x78] sm:$0xff]  ;;  %v754_v34 = vmul.f32 %v1435_v52, %v715_v21  ;;  %854 = vst [vmem:[%s1391_s30 + $0x48] sm:$0xff] %v822_v49  ;;  %v832_v21 = vmax.f32 %v800_v9, 0.0  ;;  %v731_v23 = vld [vmem:[#allocation2 + $0xe0] sm:$0xff]  ;;  %861 = vst [vmem:[%s1391_s30 + $0x80] sm:$0xff] %v829_v12  ;;  %v767_v32 = vmul.f32 %v1435_v52, %v728_v16  ;;  %v768_v33 = vmul.f32 %v1435_v52, %v729_v17 }
 0x128   : > { %v716_v22 = vld [vmem:[#allocation2 + $0x68] sm:$0xff]  ;;  %v757_v40 = vmul.f32 %v1435_v52, %v718_v28  ;;  %v795_v45 = vadd.f32 %v1440_v53, %v756_v36  ;;  %v835_v28 = vmax.f32 %v803_v15, 0.0  ;;  %v734_v30 = vld [vmem:[#allocation2 + $0xf8] sm:$0xff]  ;;  %862 = vst [vmem:[%s1391_s30 + $0x88] sm:$0xff] %v830_v19  ;;  %863 = vst [vmem:[%s1391_s30 + $0x90] sm:$0xff] %v831_v20  ;;  %v770_v36 = vmul.f32 %v1435_v52, %v731_v23 }
 0x129   : > { %v755_v35 = vmul.f32 %v1435_v52, %v716_v22  ;;  %v793_v43 = vadd.f32 %v1440_v53, %v754_v34  ;;  %v804_v22 = vadd.f32 %v1440_v53, %v765_v10  ;;  %v732_v24 = vld [vmem:[#allocation2 + $0xe8] sm:$0xff]  ;;  %864 = vst [vmem:[%s1391_s30 + $0x98] sm:$0xff] %v832_v21  ;;  %v769_v34 = vmul.f32 %v1435_v52, %v730_v18 }
 0x12a   : > { %v796_v54 = vadd.f32 %v1440_v53, %v757_v40  ;;  %v827_v60 = vmax.f32 %v795_v45, 0.0  ;;  %866 = vst [vmem:[%s1391_s30 + $0xa8] sm:$0xff] %v834_v27  ;;  %867 = vst [vmem:[%s1391_s30 + $0xb0] sm:$0xff] %v835_v28  ;;  %v771_v37 = vmul.f32 %v1435_v52, %v732_v24  ;;  %v772_v38 = vmul.f32 %v1435_v52, %v733_v25 }
 0x12b   : > { %v794_v44 = vadd.f32 %v1440_v53, %v755_v35  ;;  %v825_v58 = vmax.f32 %v793_v43, 0.0  ;;  %v836_v31 = vmax.f32 %v804_v22, 0.0  ;;  %v805_v35 = vadd.f32 %v1440_v53, %v766_v29 }
 0x12c   : > { %v828_v63 = vmax.f32 %v796_v54, 0.0  ;;  %859 = vst [vmem:[%s1391_s30 + $0x70] sm:$0xff] %v827_v60  ;;  %v806_v39 = vadd.f32 %v1440_v53, %v767_v32  ;;  %v807_v40 = vadd.f32 %v1440_v53, %v768_v33  ;;  %v808_v41 = vadd.f32 %v1440_v53, %v769_v34 }
 0x12d   : > { %v826_v59 = vmax.f32 %v794_v44, 0.0  ;;  %857 = vst [vmem:[%s1391_s30 + $0x60] sm:$0xff] %v825_v58  ;;  %868 = vst [vmem:[%s1391_s30 + $0xb8] sm:$0xff] %v836_v31  ;;  %v773_v42 = vmul.f32 %v1435_v52, %v734_v30  ;;  %v837_v43 = vmax.f32 %v805_v35, 0.0  ;;  %v809_v44 = vadd.f32 %v1440_v53, %v770_v36 }
 0x12e   : > { %860 = vst [vmem:[%s1391_s30 + $0x78] sm:$0xff] %v828_v63  ;;  %v810_v45 = vadd.f32 %v1440_v53, %v771_v37  ;;  %v811_v46 = vadd.f32 %v1440_v53, %v772_v38  ;;  %v838_v47 = vmax.f32 %v806_v39, 0.0  ;;  %v839_v48 = vmax.f32 %v807_v40, 0.0 }
 0x12f   : > { %858 = vst [vmem:[%s1391_s30 + $0x68] sm:$0xff] %v826_v59  ;;  %v840_v49 = vmax.f32 %v808_v41, 0.0  ;;  %v812_v50 = vadd.f32 %v1440_v53, %v773_v42  ;;  %869 = vst [vmem:[%s1391_s30 + $0xc0] sm:$0xff] %v837_v43  ;;  %v841_v51 = vmax.f32 %v809_v44, 0.0 }
 0x130   : > { %v842_v54 = vmax.f32 %v810_v45, 0.0  ;;  %v843_v52 = vmax.f32 %v811_v46, 0.0  ;;  %870 = vst [vmem:[%s1391_s30 + $0xc8] sm:$0xff] %v838_v47  ;;  %871 = vst [vmem:[%s1391_s30 + $0xd0] sm:$0xff] %v839_v48 }
 0x131   : > { %872 = vst [vmem:[%s1391_s30 + $0xd8] sm:$0xff] %v840_v49  ;;  %v844_v55 = vmax.f32 %v812_v50, 0.0  ;;  %873 = vst [vmem:[%s1391_s30 + $0xe0] sm:$0xff] %v841_v51 }
 0x132   : > { %874 = vst [vmem:[%s1391_s30 + $0xe8] sm:$0xff] %v842_v54  ;;  %875 = vst [vmem:[%s1391_s30 + $0xf0] sm:$0xff] %v843_v52 }
 0x133   : > { %876 = vst [vmem:[%s1391_s30 + $0xf8] sm:$0xff] %v844_v55 }
 0x134 PF: > { %s1032_s18 = sshll.u32 %s1262_s19, 12  ;;  %s891_s7 = sshll.u32 %s1391_s30, 4  ;;  %s1545_s7 = int_to_ptr.vmem [resolvable:$true] %s891_s7 }
 0x135   : > { %s1542_s29 = scalar_lea.hbm %s1605_s4, %s1032_s18  ;;  %s1549_s8 = scalar_lea.sflag [#allocation4], %s215_s6 }
 0x136   : > { %s1180_s9 = scalar_lea.vmem %s1545_s7, 4096  ;;  %s1277_s19 = smov [#allocation3]  }
 0x137   : > { %p1181_p2 = scmp.ne.s32.totalorder %s1545_s7, %s1180_s9  ;;  %s1184_s10 = sshll.u32 %s1277_s19, 4  ;;  %s1185_s10 = int_to_ptr.vmem [resolvable:$false] %s1184_s10 }
 0x138   : > { %s1186_s11 = scalar_lea.vmem %s1185_s10, 8192  ;;  %p1187_p6 = scmp.lt.s32.totalorder %s1545_s7, %s1185_s10 }
 0x139   : > { %p1182_p4 = pnand %p1181_p2, %p1354_p3  ;;  %p1188_p7 = scmp.lt.s32.totalorder %s1186_s11, %s1180_s9 }
 0x13b   : > { %p1183_p5 = pneg %p1182_p4  ;;  %p1189_p8 = por %p1188_p7, %p1187_p6 }
 0x13d   : > { %p1190_p10 = pnand %p1189_p8, %p1183_p5 }
 0x13f   : > { %1193 = shalt.err (!%p1190_p10)
}
 0x140   : > { %s1194_s6 = scalar_lea.hbm %s1542_s29, 4096  ;;  %s1198_s13 = scalar_lea.hbm %s1605_s4, 8192 }
 0x141   : > { %p1195_p11 = scmp.ne.s32.totalorder %s1542_s29, %s1194_s6  ;;  %p1199_p0 = scmp.lt.u32.totalorder %s1542_s29, %s1605_s4 }
 0x142   : > { %p1200_p1 = scmp.lt.u32.totalorder %s1198_s13, %s1194_s6  ;;  %p1202_p4 = scmp.lt.u32.totalorder %s1194_s6, %s1542_s29 }
 0x143   : > { %p1196_p12 = pnand %p1195_p11, %p1354_p3 }
 0x144   : > { %p1201_p2 = por %p1200_p1, %p1199_p0 }
 0x145   : > { %p1197_p13 = pneg %p1196_p12 }
 0x146   : > { %p1203_p5 = por %p1202_p4, %p1201_p2 }
 0x148   : > { %p1204_p6 = pnand %p1203_p5, %p1197_p13 }
 0x14a   : > { %1207 = shalt.err (!%p1204_p6)
}
 0x14b   : > { %s1278_s23 = smov 128   ;;  %s1279_s24 = smov 8  }
 0x14c   : > { %1089 = dma.vmem_to_hbm [thread:$0]  (%p1354_p3), %s1545_s7, 4096, %s1542_s29, %s1549_s8, %s1278_s23, %s1278_s23, %s1279_s24  }
 0x14d PF: > { %p1095_p7 = scmp.ge.s32.totalorder %s1274_s22, 2  ;;  %s906_s9 = sand.u32 1, %s1246_s15  }
 0x14e   : > { %s907_s19 = scalar_lea.sflag [#allocation4], %s906_s9 }
 0x14f   : > { %p1092_p8 = pnand %p1095_p7, %p1364_p9 }
 0x151   : > { %1241 = dma.done.wait (!%p1092_p8), %s907_s19, 4096  }
 0x152   : > { %1243 = vsyncadd (!%p1092_p8), %s907_s19, 4294963200  ;;  %s17_s22 = sadd.s32 1, %s1274_s22   ;;  %s1608_s15 = smov %s1250_s16 }
 0x153   : > { %p14_p10 = scmp.ge.s32.totalorder %s17_s22, 8   ;;  %s1609_s16 = smov %s1254_s17 }
 0x154   : > { %s1610_s17 = smov %s1372_s5  ;;  %s1611_s18 = smov %s1266_s20 }
 0x155   : > { %s1612_s19 = smov %s1270_s21  ;;  %s1613_s20 = smov %s1616_s25 }
 0x156   : > { %s1614_s21 = smov %s1620_s26  ;;  %16 = sbr.rel (!%p14_p10) target bundleno = 5 (0x5), region = 83 }
 0x15d   :  { %912 = vsyncpa [#allocation4], 1 }
 0x15e   :  { %914 = vsyncpa [#allocation4 + $0x1], 1 }

</bundles_post_ra>
